<compile_context>
chip_gen: v6e
topology: v6e:2x2x1
jax: 0.10.0
libtpu: 0.0.40
codegen_flags: <defaults>
</compile_context>

<pallas_src>
import jax
import jax.numpy as jnp
from jax.experimental import pallas as pl
from jax.experimental.pallas import tpu as pltpu


def _round_up(x, m):
    return (x + m - 1) // m * m


def mlp_kernel(x_ref, w1_ref, b1_ref, w2_ref, b2_ref, w3_ref, b3_ref, o_ref):
    # fc1 + ReLU  (bf16 operands, f32 accumulation on the MXU)
    h1 = jnp.dot(x_ref[...], w1_ref[...], preferred_element_type=jnp.float32)
    h1 = jnp.maximum(h1 + b1_ref[...], 0.0).astype(jnp.bfloat16)
    # fc2 + ReLU
    h2 = jnp.dot(h1, w2_ref[...], preferred_element_type=jnp.float32)
    h2 = jnp.maximum(h2 + b2_ref[...], 0.0).astype(jnp.bfloat16)
    # fc3 (no activation, matches the PyTorch forward); lane-dense padded output
    o = jnp.dot(h2, w3_ref[...], preferred_element_type=jnp.float32)
    o_ref[...] = (o + b3_ref[...]).astype(o_ref.dtype)


def mlp_classifier_forward(x, params, *, batch_tile=256,
                           vmem_limit_bytes=48 * 1024 * 1024):
    """3-layer MLP forward pass with a fused Pallas kernel tiled over batch."""
    w1, b1, w2, b2, w3, b3 = params
    B, D_in = x.shape
    H = w1.shape[1]
    C = w3.shape[1]

    # --- Zero-pad feature / hidden / class dims to lane (128) multiples so all
    #     matmuls and the output store are lane-dense. ---
    D_pad = max(_round_up(D_in, 128), 128)
    H_pad = max(_round_up(H, 128), 128)
    C_pad = max(_round_up(C, 128), 128)

    if D_pad != D_in:
        x = jnp.pad(x, ((0, 0), (0, D_pad - D_in)))
    w1p = jnp.zeros((D_pad, H_pad), w1.dtype).at[:D_in, :H].set(w1)
    b1p = jnp.zeros((1, H_pad), b1.dtype).at[:, :H].set(jnp.reshape(b1, (1, H)))
    w2p = jnp.zeros((H_pad, H_pad), w2.dtype).at[:H, :H].set(w2)
    b2p = jnp.zeros((1, H_pad), b2.dtype).at[:, :H].set(jnp.reshape(b2, (1, H)))
    w3p = jnp.zeros((H_pad, C_pad), w3.dtype).at[:H, :C].set(w3)
    b3p = jnp.zeros((1, C_pad), b3.dtype).at[:, :C].set(jnp.reshape(b3, (1, C)))

    # --- Batch tiling: full MXU M dimension when the batch allows; tiny
    #     batches run as a single grid step over the 8-aligned padded batch. ---
    if B >= batch_tile:
        tile = batch_tile
    else:
        tile = max(_round_up(B, 8), 8)
    B_pad = _round_up(B, tile)
    if B_pad != B:
        x = jnp.pad(x, ((0, B_pad - B), (0, 0)))
    grid = (B_pad // tile,)

    # --- bf16 matmul operands; biases / accumulation / output stay f32. ---
    xb = x.astype(jnp.bfloat16)
    w1b = w1p.astype(jnp.bfloat16)
    w2b = w2p.astype(jnp.bfloat16)
    w3b = w3p.astype(jnp.bfloat16)
    b1f = b1p.astype(jnp.float32)
    b2f = b2p.astype(jnp.float32)
    b3f = b3p.astype(jnp.float32)

    # Constant operands: index map never changes -> DMA'd into VMEM once,
    # reused across every grid step.
    const = lambda shape: pl.BlockSpec(shape, lambda i: (0, 0))

    out = pl.pallas_call(
        mlp_kernel,
        out_shape=jax.ShapeDtypeStruct((B_pad, C_pad), jnp.float32),
        grid_spec=pltpu.PrefetchScalarGridSpec(
            num_scalar_prefetch=0,
            grid=grid,
            in_specs=[
                pl.BlockSpec((tile, D_pad), lambda i: (i, 0)),  # x tile (pipelined)
                const((D_pad, H_pad)),   # w1
                const((1, H_pad)),       # b1
                const((H_pad, H_pad)),   # w2
                const((1, H_pad)),       # b2
                const((H_pad, C_pad)),   # w3 (padded classes)
                const((1, C_pad)),       # b3 (padded classes)
            ],
            out_specs=pl.BlockSpec((tile, C_pad), lambda i: (i, 0)),
        ),
        compiler_params=pltpu.CompilerParams(
            # Batch axis is independent -> megacore / dual-TC sharding on v7x
            # whenever the grid has >= 2 steps.
            dimension_semantics=("parallel",),
            vmem_limit_bytes=vmem_limit_bytes,
        ),
    )(xb, w1b, b1f, w2b, b2f, w3b, b3f)

    # Drop batch padding and the padded class columns.
    return out[:B, :C]


def init_params(key, input_size, hidden_size, num_classes):
    """Deterministic init mimicking nn.Linear's uniform(-1/sqrt(fan_in), 1/sqrt(fan_in))."""
    ks = jax.random.split(key, 6)

    def linear(kw, kb, fan_in, fan_out):
        bound = 1.0 / jnp.sqrt(fan_in)
        w = jax.random.uniform(kw, (fan_in, fan_out), jnp.float32, -bound, bound)
        b = jax.random.uniform(kb, (1, fan_out), jnp.float32, -bound, bound)
        return w, b

    w1, b1 = linear(ks[0], ks[1], input_size, hidden_size)
    w2, b2 = linear(ks[2], ks[3], hidden_size, hidden_size)
    w3, b3 = linear(ks[4], ks[5], hidden_size, num_classes)
    return (w1, b1, w2, b2, w3, b3)


if __name__ == "__main__":
    # Small shapes consistent with the module (original: input 4096, hidden 512,
    # classes 2 — scaled down here).
    B, INPUT_SIZE, HIDDEN, NUM_CLASSES = 16, 512, 256, 2

    key = jax.random.PRNGKey(0)
    kx, kp = jax.random.split(key)
    x = jax.random.normal(kx, (B, INPUT_SIZE), jnp.float32)
    params = init_params(kp, INPUT_SIZE, HIDDEN, NUM_CLASSES)

    out = mlp_classifier_forward(x, params)
    out = jax.block_until_ready(out)
    assert out.shape == (B, NUM_CLASSES)

    # Pure-JAX reference with the same bf16-operand / f32-accumulate math.
    w1, b1, w2, b2, w3, b3 = params
    ref = jnp.dot(x.astype(jnp.bfloat16), w1.astype(jnp.bfloat16),
                  preferred_element_type=jnp.float32) + b1
    ref = jnp.maximum(ref, 0.0).astype(jnp.bfloat16)
    ref = jnp.dot(ref, w2.astype(jnp.bfloat16),
                  preferred_element_type=jnp.float32) + b2
    ref = jnp.maximum(ref, 0.0).astype(jnp.bfloat16)
    ref = jnp.dot(ref, w3.astype(jnp.bfloat16),
                  preferred_element_type=jnp.float32) + b3

    assert jnp.allclose(out, ref, atol=1e-2, rtol=1e-2), "mismatch vs reference"

    print("KERNEL_OK")
</pallas_src>

<mosaic_0001>
module attributes {stable_mosaic.version = 11 : i64} {
  func.func @mlp_kernel(%arg0: i32, %arg1: memref<16x512xbf16, #tpu.memory_space<vmem>>, %arg2: memref<512x256xbf16, #tpu.memory_space<vmem>>, %arg3: memref<1x256xf32, #tpu.memory_space<vmem>>, %arg4: memref<256x256xbf16, #tpu.memory_space<vmem>>, %arg5: memref<1x256xf32, #tpu.memory_space<vmem>>, %arg6: memref<256x128xbf16, #tpu.memory_space<vmem>>, %arg7: memref<1x128xf32, #tpu.memory_space<vmem>>, %arg8: memref<16x128xf32, #tpu.memory_space<vmem>>) attributes {dimension_semantics = [#tpu.dimension_semantics<parallel>], iteration_bounds = array<i64: 1>, scalar_prefetch = 0 : i64, scratch_operands = 0 : i64, tpu.core_type = #tpu.core_type<tc>, window_params = [{transform_indices = @transform_0, window_bounds = array<i64: 16, 512>}, {pipeline_mode = #tpu.pipeline_mode<synchronous>, transform_indices = @transform_1, window_bounds = array<i64: 512, 256>}, {pipeline_mode = #tpu.pipeline_mode<synchronous>, transform_indices = @transform_2, window_bounds = array<i64: 1, 256>}, {pipeline_mode = #tpu.pipeline_mode<synchronous>, transform_indices = @transform_3, window_bounds = array<i64: 256, 256>}, {pipeline_mode = #tpu.pipeline_mode<synchronous>, transform_indices = @transform_4, window_bounds = array<i64: 1, 256>}, {pipeline_mode = #tpu.pipeline_mode<synchronous>, transform_indices = @transform_5, window_bounds = array<i64: 256, 128>}, {pipeline_mode = #tpu.pipeline_mode<synchronous>, transform_indices = @transform_6, window_bounds = array<i64: 1, 128>}, {transform_indices = @transform_7, window_bounds = array<i64: 16, 128>}]} {
    %c0 = arith.constant 0 : index
    %c0_0 = arith.constant 0 : index
    %0 = vector.load %arg1[%c0, %c0_0] : memref<16x512xbf16, #tpu.memory_space<vmem>>, vector<16x512xbf16>
    %c0_1 = arith.constant 0 : index
    %c0_2 = arith.constant 0 : index
    %1 = vector.load %arg2[%c0_1, %c0_2] : memref<512x256xbf16, #tpu.memory_space<vmem>>, vector<512x256xbf16>
    %cst = arith.constant dense<0.000000e+00> : vector<16x256xf32>
    %2 = tpu.matmul %0, %1, %cst {dimension_numbers = #tpu.dot_dimension_numbers<[1], [0], [0], [1], [0, 0, 1, 1], [], []>} : vector<16x512xbf16>, vector<512x256xbf16>, vector<16x256xf32> -> vector<16x256xf32>
    %c0_3 = arith.constant 0 : index
    %c0_4 = arith.constant 0 : index
    %3 = vector.load %arg3[%c0_3, %c0_4] : memref<1x256xf32, #tpu.memory_space<vmem>>, vector<1x256xf32>
    %4 = vector.broadcast %3 : vector<1x256xf32> to vector<16x256xf32>
    %5 = arith.addf %2, %4 : vector<16x256xf32>
    %cst_5 = arith.constant 0.000000e+00 : f32
    %6 = vector.broadcast %cst_5 : f32 to vector<16x256xf32>
    %7 = arith.maximumf %5, %6 : vector<16x256xf32>
    %8 = arith.truncf %7 : vector<16x256xf32> to vector<16x256xbf16>
    %c0_6 = arith.constant 0 : index
    %c0_7 = arith.constant 0 : index
    %9 = vector.load %arg4[%c0_6, %c0_7] : memref<256x256xbf16, #tpu.memory_space<vmem>>, vector<256x256xbf16>
    %cst_8 = arith.constant dense<0.000000e+00> : vector<16x256xf32>
    %10 = tpu.matmul %8, %9, %cst_8 {dimension_numbers = #tpu.dot_dimension_numbers<[1], [0], [0], [1], [0, 0, 1, 1], [], []>} : vector<16x256xbf16>, vector<256x256xbf16>, vector<16x256xf32> -> vector<16x256xf32>
    %c0_9 = arith.constant 0 : index
    %c0_10 = arith.constant 0 : index
    %11 = vector.load %arg5[%c0_9, %c0_10] : memref<1x256xf32, #tpu.memory_space<vmem>>, vector<1x256xf32>
    %12 = vector.broadcast %11 : vector<1x256xf32> to vector<16x256xf32>
    %13 = arith.addf %10, %12 : vector<16x256xf32>
    %cst_11 = arith.constant 0.000000e+00 : f32
    %14 = vector.broadcast %cst_11 : f32 to vector<16x256xf32>
    %15 = arith.maximumf %13, %14 : vector<16x256xf32>
    %16 = arith.truncf %15 : vector<16x256xf32> to vector<16x256xbf16>
    %c0_12 = arith.constant 0 : index
    %c0_13 = arith.constant 0 : index
    %17 = vector.load %arg6[%c0_12, %c0_13] : memref<256x128xbf16, #tpu.memory_space<vmem>>, vector<256x128xbf16>
    %cst_14 = arith.constant dense<0.000000e+00> : vector<16x128xf32>
    %18 = tpu.matmul %16, %17, %cst_14 {dimension_numbers = #tpu.dot_dimension_numbers<[1], [0], [0], [1], [0, 0, 1, 1], [], []>} : vector<16x256xbf16>, vector<256x128xbf16>, vector<16x128xf32> -> vector<16x128xf32>
    %c0_15 = arith.constant 0 : index
    %c0_16 = arith.constant 0 : index
    %19 = vector.load %arg7[%c0_15, %c0_16] : memref<1x128xf32, #tpu.memory_space<vmem>>, vector<1x128xf32>
    %20 = vector.broadcast %19 : vector<1x128xf32> to vector<16x128xf32>
    %21 = arith.addf %18, %20 : vector<16x128xf32>
    %c0_17 = arith.constant 0 : index
    %c0_18 = arith.constant 0 : index
    %22 = vector.load %arg8[%c0_17, %c0_18] : memref<16x128xf32, #tpu.memory_space<vmem>>, vector<16x128xf32>
    tpu.vector_store %arg8[%c0_17, %c0_18], %21 {strides = array<i32>} : memref<16x128xf32, #tpu.memory_space<vmem>>, vector<16x128xf32>,
    return
  }
  func.func @transform_0(%arg0: i32) -> (i32, i32) {
    %c0_i32 = arith.constant 0 : i32
    %c0_i32_0 = arith.constant 0 : i32
    return %arg0, %c0_i32 : i32, i32
  }
  func.func @transform_1(%arg0: i32) -> (i32, i32) {
    %c0_i32 = arith.constant 0 : i32
    %c0_i32_0 = arith.constant 0 : i32
    %c0_i32_1 = arith.constant 0 : i32
    return %c0_i32, %c0_i32_0 : i32, i32
  }
  func.func @transform_2(%arg0: i32) -> (i32, i32) {
    %c0_i32 = arith.constant 0 : i32
    %c0_i32_0 = arith.constant 0 : i32
    %c0_i32_1 = arith.constant 0 : i32
    return %c0_i32, %c0_i32_0 : i32, i32
  }
  func.func @transform_3(%arg0: i32) -> (i32, i32) {
    %c0_i32 = arith.constant 0 : i32
    %c0_i32_0 = arith.constant 0 : i32
    %c0_i32_1 = arith.constant 0 : i32
    return %c0_i32, %c0_i32_0 : i32, i32
  }
  func.func @transform_4(%arg0: i32) -> (i32, i32) {
    %c0_i32 = arith.constant 0 : i32
    %c0_i32_0 = arith.constant 0 : i32
    %c0_i32_1 = arith.constant 0 : i32
    return %c0_i32, %c0_i32_0 : i32, i32
  }
  func.func @transform_5(%arg0: i32) -> (i32, i32) {
    %c0_i32 = arith.constant 0 : i32
    %c0_i32_0 = arith.constant 0 : i32
    %c0_i32_1 = arith.constant 0 : i32
    return %c0_i32, %c0_i32_0 : i32, i32
  }
  func.func @transform_6(%arg0: i32) -> (i32, i32) {
    %c0_i32 = arith.constant 0 : i32
    %c0_i32_0 = arith.constant 0 : i32
    %c0_i32_1 = arith.constant 0 : i32
    return %c0_i32, %c0_i32_0 : i32, i32
  }
  func.func @transform_7(%arg0: i32) -> (i32, i32) {
    %c0_i32 = arith.constant 0 : i32
    %c0_i32_0 = arith.constant 0 : i32
    return %arg0, %c0_i32 : i32, i32
  }
}

</mosaic_0001>

<bundles_post_ra>
// kernel: tpu_custom_call.1
= control target key start
LH: loop header
LB: loop body
LE: loop exit
PB: predicated region body
PF: predicated region fallthrough
CT: control target
= control target key end

     0   :  { %12 = vsyncpa [#allocation3], 0  ;;  %s1553_s0 = inlined_call_operand.hbm [shape: bf16[16,512], index: 0, kind: input, shape index: {}]   ;;  %s1554_s1 = inlined_call_operand.hbm [shape: bf16[512,256], index: 1, kind: input, shape index: {}]   ;;  %s1555_s2 = inlined_call_operand.vmem [shape: f32[1,256], index: 2, kind: input, shape index: {}]   ;;  %s1556_s3 = inlined_call_operand.hbm [shape: bf16[256,256], index: 3, kind: input, shape index: {}]   ;;  %s1557_s4 = inlined_call_operand.vmem [shape: f32[1,256], index: 4, kind: input, shape index: {}]   ;;  %s1558_s5 = inlined_call_operand.hbm [shape: bf16[256,128], index: 5, kind: input, shape index: {}]   ;;  %s1559_s6 = inlined_call_operand.vmem [shape: f32[1,128], index: 6, kind: input, shape index: {}]   ;;  %s1560_s7 = inlined_call_operand.hbm [shape: f32[16,128], index: 7, kind: output, shape index: {}]  }
   0x1   :  { %13 = vsyncpa [#allocation6], 0 }
   0x2   :  { %14 = vsyncpa [#allocation9], 0 }
   0x3   :  { %15 = vsyncpa [#allocation4], 0  ;;  %s1469_s24 = smov [#allocation5]  }
   0x4   :  { %s33_s25 = sshll.u32 %s1469_s24, 4  ;;  %s34_s25 = int_to_ptr.vmem [resolvable:$true] %s33_s25 }
   0x5   :  { %s1369_s26 = scalar_lea.vmem %s34_s25, 8192  ;;  %p1374_p1 = scmp.lt.s32.totalorder %s34_s25, %s34_s25 }
   0x6   :  { %p1370_p0 = scmp.ne.s32.totalorder %s34_s25, %s1369_s26  ;;  %p1375_p2 = scmp.lt.s32.totalorder %s1369_s26, %s1369_s26 }
   0x8   :  { %p1376_p3 = por %p1375_p2, %p1374_p1 }
   0xa   :  { %p1377_p4 = pnand %p1376_p3, %p1370_p0 }
   0xc   :  { %1380 = shalt.err (!%p1377_p4)
}
   0xd   :  { %s1470_s27 = smov 128   ;;  %s1471_s28 = smov 8  }
   0xe   :  { %39 = dma.hbm_to_vmem [thread:$0]  %s1554_s1, 8192, %s34_s25, [#allocation6], %s1470_s27, %s1470_s27, %s1471_s28  }
   0xf   :  { %s1472_s8 = smov [#allocation2]  }
  0x10   :  { %s21_s9 = sshll.u32 %s1472_s8, 4  ;;  %s22_s9 = int_to_ptr.vmem [resolvable:$true] %s21_s9 }
  0x11   :  { %s1389_s10 = scalar_lea.vmem %s22_s9, 512  ;;  %p1394_p6 = scmp.lt.s32.totalorder %s22_s9, %s22_s9 }
  0x12   :  { %p1390_p5 = scmp.ne.s32.totalorder %s22_s9, %s1389_s10  ;;  %p1395_p7 = scmp.lt.s32.totalorder %s1389_s10, %s1389_s10 }
  0x14   :  { %p1396_p8 = por %p1395_p7, %p1394_p6 }
  0x16   :  { %p1397_p9 = pnand %p1396_p8, %p1390_p5 }
  0x18   :  { %1400 = shalt.err (!%p1397_p9)
}
  0x19   :  { %s1473_s11 = smov 256   ;;  %s1474_s12 = smov 16  }
  0x1a   :  { %27 = dma.hbm_to_vmem [thread:$0]  %s1553_s0, 512, %s22_s9, [#allocation3], %s1473_s11, %s1473_s11, %s1474_s12  }
  0x1b   :  { %s1475_s15 = smov [#allocation7]   ;;  %s1476_s17 = smov [#allocation8]  }
  0x1c   :  { %s47_s16 = sshll.u32 %s1475_s15, 4  ;;  %s61_s1 = sshll.u32 %s1476_s17, 4  ;;  %s48_s16 = int_to_ptr.vmem [resolvable:$true] %s47_s16  ;;  %s62_s1 = int_to_ptr.vmem [resolvable:$true] %s61_s1 }
  0x1d   :  { %s1409_s18 = scalar_lea.vmem %s48_s16, 4096  ;;  %p1414_p11 = scmp.lt.s32.totalorder %s48_s16, %s48_s16 }
  0x1e   :  { %p1410_p10 = scmp.ne.s32.totalorder %s48_s16, %s1409_s18  ;;  %p1415_p12 = scmp.lt.s32.totalorder %s1409_s18, %s1409_s18 }
  0x20   :  { %p1416_p13 = por %p1415_p12, %p1414_p11 }
  0x22   :  { %p1417_p0 = pnand %p1416_p13, %p1410_p10 }
  0x24   :  { %1420 = shalt.err (!%p1417_p0)
}
  0x25   :  { %53 = dma.hbm_to_vmem [thread:$0]  %s1556_s3, 4096, %s48_s16, [#allocation6], %s1470_s27, %s1470_s27, %s1471_s28  }
  0x26   :  { %s1429_s0 = scalar_lea.vmem %s62_s1, 2048  ;;  %p1434_p2 = scmp.lt.s32.totalorder %s62_s1, %s62_s1 }
  0x27   :  { %p1430_p1 = scmp.ne.s32.totalorder %s62_s1, %s1429_s0  ;;  %p1435_p3 = scmp.lt.s32.totalorder %s1429_s0, %s1429_s0 }
  0x29   :  { %p1436_p4 = por %p1435_p3, %p1434_p2 }
  0x2b   :  { %p1437_p5 = pnand %p1436_p4, %p1430_p1 }
  0x2d   :  { %1440 = shalt.err (!%p1437_p5)
}
  0x2e   :  { %s1477_s21 = smov 64   ;;  %s1478_s22 = smov 4  }
  0x2f   :  { %67 = dma.hbm_to_vmem [thread:$0]  %s1558_s5, 2048, %s62_s1, [#allocation9], %s1477_s21, %s1477_s21, %s1478_s22  }
  0x30   :  { %1461 = dma.done.wait [#allocation3], 512  }
  0x31   :  { %1462 = vsyncadd [#allocation3], 4294966784 }
  0x32   :  { %1463 = dma.done.wait [#allocation6], 12288  }
  0x33   :  { %1464 = vsyncadd [#allocation6], 4294955008 }
  0x34   :  { %1465 = dma.done.wait [#allocation9], 2048  }
  0x35   :  { %1466 = vsyncadd [#allocation9], 4294965248  ;;  %v1195_v0 = vld [vmem:[#allocation5 + $0x74] ss:$8 sps:$4 sm:$0xff]   ;;  %v1199_v2 = vld [vmem:[#allocation5 + $0x70] ss:$8 sps:$4 sm:$0xff]  }
  0x36   :  { %v1197_v1 = vld [vmem:[#allocation5 + $0x174] ss:$8 sps:$4 sm:$0xff]   ;;  %503 = vmatprep.subr.bf16.mxu0 %v1195_v0  ;;  %v1200_v3 = vld [vmem:[#allocation5 + $0x170] ss:$8 sps:$4 sm:$0xff]   ;;  %v1201_v4 = vld [vmem:[#allocation5 + $0x64] ss:$8 sps:$4 sm:$0xff]  }
  0x37   :  { %546 = vmatprep.subr.bf16.mxu1 %v1197_v1  ;;  %504 = vmatpush1.bf16.msra.mxu0 %v1199_v2  ;;  %v1203_v5 = vld [vmem:[#allocation5 + $0x164] ss:$8 sps:$4 sm:$0xff]   ;;  %v1205_v6 = vld [vmem:[#allocation5 + $0x60] ss:$8 sps:$4 sm:$0xff]   ;;  %v1207_v8 = vld [vmem:[#allocation5 + $0x54] ss:$8 sps:$4 sm:$0xff]  }
  0x38   :  { %547 = vmatpush1.bf16.msra.mxu1 %v1200_v3  ;;  %505 = vmatprep.subr.bf16.mxu0 %v1201_v4  ;;  %v1206_v7 = vld [vmem:[#allocation5 + $0x160] ss:$8 sps:$4 sm:$0xff]   ;;  %v1209_v9 = vld [vmem:[#allocation5 + $0x154] ss:$8 sps:$4 sm:$0xff]   ;;  %v1211_v10 = vld [vmem:[#allocation5 + $0x50] ss:$8 sps:$4 sm:$0xff]  }
  0x39   :  { %548 = vmatprep.subr.bf16.mxu1 %v1203_v5  ;;  %v1212_v11 = vld [vmem:[#allocation5 + $0x150] ss:$8 sps:$4 sm:$0xff]   ;;  %v1213_v12 = vld [vmem:[#allocation5 + $0x44] ss:$8 sps:$4 sm:$0xff]   ;;  %v1217_v14 = vld [vmem:[#allocation5 + $0x40] ss:$8 sps:$4 sm:$0xff]  }
  0x3a   :  { %v1215_v13 = vld [vmem:[#allocation5 + $0x144] ss:$8 sps:$4 sm:$0xff]   ;;  %v1218_v15 = vld [vmem:[#allocation5 + $0x140] ss:$8 sps:$4 sm:$0xff]   ;;  %v1219_v16 = vld [vmem:[#allocation5 + $0x34] ss:$8 sps:$4 sm:$0xff]  }
  0x3b   :  { %506 = vmatpush1.bf16.msra.mxu0 %v1205_v6  ;;  %v1221_v17 = vld [vmem:[#allocation5 + $0x134] ss:$8 sps:$4 sm:$0xff]   ;;  %v1223_v18 = vld [vmem:[#allocation5 + $0x30] ss:$8 sps:$4 sm:$0xff]   ;;  %v1225_v20 = vld [vmem:[#allocation5 + $0x24] ss:$8 sps:$4 sm:$0xff]  }
  0x3c   :  { %549 = vmatpush1.bf16.msra.mxu1 %v1206_v7  ;;  %507 = vmatprep.subr.bf16.mxu0 %v1207_v8  ;;  %v1224_v19 = vld [vmem:[#allocation5 + $0x130] ss:$8 sps:$4 sm:$0xff]   ;;  %v1227_v21 = vld [vmem:[#allocation5 + $0x124] ss:$8 sps:$4 sm:$0xff]   ;;  %v1229_v22 = vld [vmem:[#allocation5 + $0x20] ss:$8 sps:$4 sm:$0xff]  }
  0x3d   :  { %550 = vmatprep.subr.bf16.mxu1 %v1209_v9  ;;  %v1230_v23 = vld [vmem:[#allocation5 + $0x120] ss:$8 sps:$4 sm:$0xff]   ;;  %v1231_v24 = vld [vmem:[#allocation5 + $0x14] ss:$8 sps:$4 sm:$0xff]   ;;  %v1235_v26 = vld [vmem:[#allocation5 + $0x10] ss:$8 sps:$4 sm:$0xff]  }
  0x3e   :  { %v1233_v25 = vld [vmem:[#allocation5 + $0x114] ss:$8 sps:$4 sm:$0xff]   ;;  %v1236_v27 = vld [vmem:[#allocation5 + $0x110] ss:$8 sps:$4 sm:$0xff]   ;;  %v1237_v28 = vld [vmem:[#allocation5 + $0x4] ss:$8 sps:$4 sm:$0xff]  }
  0x3f   :  { %508 = vmatpush1.bf16.msra.mxu0 %v1211_v10  ;;  %v1239_v29 = vld [vmem:[#allocation5 + $0x104] ss:$8 sps:$4 sm:$0xff]   ;;  %v1241_v30 = vld [vmem:[#allocation5] ss:$8 sps:$4 sm:$0xff]   ;;  %v1243_v32 = vld [vmem:[#allocation5 + $0xf4] ss:$8 sps:$4 sm:$0xff]  }
  0x40   :  { %551 = vmatpush1.bf16.msra.mxu1 %v1212_v11  ;;  %509 = vmatprep.subr.bf16.mxu0 %v1213_v12  ;;  %v1242_v31 = vld [vmem:[#allocation5 + $0x100] ss:$8 sps:$4 sm:$0xff]   ;;  %v1245_v33 = vld [vmem:[#allocation5 + $0x1f4] ss:$8 sps:$4 sm:$0xff]   ;;  %v1247_v34 = vld [vmem:[#allocation5 + $0xf0] ss:$8 sps:$4 sm:$0xff]  }
  0x41   :  { %552 = vmatprep.subr.bf16.mxu1 %v1215_v13  ;;  %v1248_v35 = vld [vmem:[#allocation5 + $0x1f0] ss:$8 sps:$4 sm:$0xff]   ;;  %v1249_v36 = vld [vmem:[#allocation5 + $0xe4] ss:$8 sps:$4 sm:$0xff]   ;;  %v1253_v38 = vld [vmem:[#allocation5 + $0xe0] ss:$8 sps:$4 sm:$0xff]  }
  0x42   :  { %v1251_v37 = vld [vmem:[#allocation5 + $0x1e4] ss:$8 sps:$4 sm:$0xff]   ;;  %v1254_v39 = vld [vmem:[#allocation5 + $0x1e0] ss:$8 sps:$4 sm:$0xff]   ;;  %v1255_v40 = vld [vmem:[#allocation5 + $0xd4] ss:$8 sps:$4 sm:$0xff]  }
  0x43   :  { %510 = vmatpush1.bf16.msra.mxu0 %v1217_v14  ;;  %v1257_v41 = vld [vmem:[#allocation5 + $0x1d4] ss:$8 sps:$4 sm:$0xff]   ;;  %v1259_v42 = vld [vmem:[#allocation5 + $0xd0] ss:$8 sps:$4 sm:$0xff]   ;;  %v1261_v44 = vld [vmem:[#allocation5 + $0xc4] ss:$8 sps:$4 sm:$0xff]  }
  0x44   :  { %553 = vmatpush1.bf16.msra.mxu1 %v1218_v15  ;;  %511 = vmatprep.subr.bf16.mxu0 %v1219_v16  ;;  %v1260_v43 = vld [vmem:[#allocation5 + $0x1d0] ss:$8 sps:$4 sm:$0xff]   ;;  %v1263_v45 = vld [vmem:[#allocation5 + $0x1c4] ss:$8 sps:$4 sm:$0xff]   ;;  %v1265_v46 = vld [vmem:[#allocation5 + $0xc0] ss:$8 sps:$4 sm:$0xff]  }
  0x45   :  { %554 = vmatprep.subr.bf16.mxu1 %v1221_v17  ;;  %v1266_v47 = vld [vmem:[#allocation5 + $0x1c0] ss:$8 sps:$4 sm:$0xff]   ;;  %v1267_v48 = vld [vmem:[#allocation5 + $0xb4] ss:$8 sps:$4 sm:$0xff]   ;;  %v1271_v52 = vld [vmem:[#allocation5 + $0xb0] ss:$8 sps:$4 sm:$0xff]  }
  0x46   :  { %v1293_v49 = vld [vmem:[#allocation2 + $0x4] ss:$16 sps:$4 sm:$0xff]   ;;  %v1296_v51 = vld [vmem:[#allocation2 + $0xc] ss:$16 sps:$4 sm:$0xff]   ;;  %v1272_v53 = vld [vmem:[#allocation5 + $0x1b0] ss:$8 sps:$4 sm:$0xff]  }
  0x47   :  { %512 = vmatpush1.bf16.msra.mxu0 %v1223_v18  ;;  %v1269_v50 = vld [vmem:[#allocation5 + $0x1b4] ss:$8 sps:$4 sm:$0xff]   ;;  %535 = vmatprep.mubr.bf16.mxu0 %v1293_v49  ;;  %v1273_v54 = vld [vmem:[#allocation5 + $0xa4] ss:$8 sps:$4 sm:$0xff]   ;;  %v1277_v56 = vld [vmem:[#allocation5 + $0xa0] ss:$8 sps:$4 sm:$0xff]  }
  0x48   :  { %555 = vmatpush1.bf16.msra.mxu1 %v1224_v19  ;;  %513 = vmatprep.subr.bf16.mxu0 %v1225_v20  ;;  %v1275_v55 = vld [vmem:[#allocation5 + $0x1a4] ss:$8 sps:$4 sm:$0xff]   ;;  %v1278_v57 = vld [vmem:[#allocation5 + $0x1a0] ss:$8 sps:$4 sm:$0xff]   ;;  %v1279_v58 = vld [vmem:[#allocation5 + $0x94] ss:$8 sps:$4 sm:$0xff]  }
  0x49   :  { %556 = vmatprep.subr.bf16.mxu1 %v1227_v21  ;;  %578 = vmatprep.mubr.bf16.mxu1 %v1296_v51  ;;  %v1281_v59 = vld [vmem:[#allocation5 + $0x194] ss:$8 sps:$4 sm:$0xff]   ;;  %v1283_v60 = vld [vmem:[#allocation5 + $0x90] ss:$8 sps:$4 sm:$0xff]   ;;  %v1285_v62 = vld [vmem:[#allocation5 + $0x84] ss:$8 sps:$4 sm:$0xff]  }
  0x4a   :  { %v1284_v61 = vld [vmem:[#allocation5 + $0x190] ss:$8 sps:$4 sm:$0xff]   ;;  %v1287_v63 = vld [vmem:[#allocation5 + $0x184] ss:$8 sps:$4 sm:$0xff]   ;;  %v1289_v0 = vld [vmem:[#allocation5 + $0x80] ss:$8 sps:$4 sm:$0xff]  }
  0x4b   :  { %514 = vmatpush1.bf16.msra.mxu0 %v1229_v22  ;;  %v1290_v1 = vld [vmem:[#allocation5 + $0x180] ss:$8 sps:$4 sm:$0xff]   ;;  %v1299_v4 = vld [vmem:[#allocation7 + $0x74] ss:$8 sps:$4 sm:$0xff]   ;;  %v1297_v5 = vld [vmem:[#allocation7 + $0x70] ss:$8 sps:$4 sm:$0xff]  }
  0x4c   :  { %557 = vmatpush1.bf16.msra.mxu1 %v1230_v23  ;;  %515 = vmatprep.subr.bf16.mxu0 %v1231_v24  ;;  %v1291_v2 = vld [vmem:[#allocation2] ss:$16 sps:$4 sm:$0xff]   ;;  %v1294_v3 = vld [vmem:[#allocation2 + $0x8] ss:$16 sps:$4 sm:$0xff]   ;;  %v1302_v6 = vld [vmem:[#allocation7 + $0x64] ss:$8 sps:$4 sm:$0xff]  }
  0x4d   :  { %558 = vmatprep.subr.bf16.mxu1 %v1233_v25  ;;  %v1300_v7 = vld [vmem:[#allocation7 + $0x60] ss:$8 sps:$4 sm:$0xff]   ;;  %v1305_v8 = vld [vmem:[#allocation7 + $0x54] ss:$8 sps:$4 sm:$0xff]   ;;  %v1303_v9 = vld [vmem:[#allocation7 + $0x50] ss:$8 sps:$4 sm:$0xff]  }
  0x4e   :  { %v1308_v10 = vld [vmem:[#allocation7 + $0x44] ss:$8 sps:$4 sm:$0xff]   ;;  %v1306_v11 = vld [vmem:[#allocation7 + $0x40] ss:$8 sps:$4 sm:$0xff]   ;;  %v1311_v12 = vld [vmem:[#allocation7 + $0x34] ss:$8 sps:$4 sm:$0xff]  }
  0x4f   :  { %516 = vmatpush1.bf16.msra.mxu0 %v1235_v26  ;;  %v1309_v13 = vld [vmem:[#allocation7 + $0x30] ss:$8 sps:$4 sm:$0xff]   ;;  %v1314_v14 = vld [vmem:[#allocation7 + $0x24] ss:$8 sps:$4 sm:$0xff]   ;;  %v1312_v15 = vld [vmem:[#allocation7 + $0x20] ss:$8 sps:$4 sm:$0xff]  }
  0x50   :  { %559 = vmatpush1.bf16.msra.mxu1 %v1236_v27  ;;  %517 = vmatprep.subr.bf16.mxu0 %v1237_v28  ;;  %v1317_v16 = vld [vmem:[#allocation7 + $0x14] ss:$8 sps:$4 sm:$0xff]   ;;  %v1315_v17 = vld [vmem:[#allocation7 + $0x10] ss:$8 sps:$4 sm:$0xff]   ;;  %v1320_v18 = vld [vmem:[#allocation7 + $0x4] ss:$8 sps:$4 sm:$0xff]  }
  0x51   :  { %560 = vmatprep.subr.bf16.mxu1 %v1239_v29  ;;  %v1318_v19 = vld [vmem:[#allocation7] ss:$8 sps:$4 sm:$0xff]   ;;  %v1323_v20 = vld [vmem:[#allocation7 + $0xf4] ss:$8 sps:$4 sm:$0xff]   ;;  %v1321_v21 = vld [vmem:[#allocation7 + $0xf0] ss:$8 sps:$4 sm:$0xff]  }
  0x52   :  { %v1326_v22 = vld [vmem:[#allocation7 + $0xe4] ss:$8 sps:$4 sm:$0xff]   ;;  %v1324_v23 = vld [vmem:[#allocation7 + $0xe0] ss:$8 sps:$4 sm:$0xff]   ;;  %v1329_v24 = vld [vmem:[#allocation7 + $0xd4] ss:$8 sps:$4 sm:$0xff]  }
  0x53   :  { %518 = vmatpush1.bf16.msra.mxu0 %v1241_v30  ;;  %v1327_v25 = vld [vmem:[#allocation7 + $0xd0] ss:$8 sps:$4 sm:$0xff]   ;;  %v1332_v26 = vld [vmem:[#allocation7 + $0xc4] ss:$8 sps:$4 sm:$0xff]   ;;  %v1330_v27 = vld [vmem:[#allocation7 + $0xc0] ss:$8 sps:$4 sm:$0xff]  }
  0x54   :  { %561 = vmatpush1.bf16.msra.mxu1 %v1242_v31  ;;  %519 = vmatprep.subr.bf16.mxu0 %v1243_v32  ;;  %v1335_v28 = vld [vmem:[#allocation7 + $0xb4] ss:$8 sps:$4 sm:$0xff]   ;;  %v1333_v29 = vld [vmem:[#allocation7 + $0xb0] ss:$8 sps:$4 sm:$0xff]   ;;  %v1338_v30 = vld [vmem:[#allocation7 + $0xa4] ss:$8 sps:$4 sm:$0xff]  }
  0x55   :  { %562 = vmatprep.subr.bf16.mxu1 %v1245_v33  ;;  %v1336_v31 = vld [vmem:[#allocation7 + $0xa0] ss:$8 sps:$4 sm:$0xff]   ;;  %v1341_v32 = vld [vmem:[#allocation7 + $0x94] ss:$8 sps:$4 sm:$0xff]   ;;  %v1339_v33 = vld [vmem:[#allocation7 + $0x90] ss:$8 sps:$4 sm:$0xff]  }
  0x56   :  { %s1479_s29 = smov [#allocation10]  }
  0x57   :  { %520 = vmatpush2.bf16.msra.mxu0 %v1247_v34  ;;  %v1344_v34 = vld [vmem:[#allocation7 + $0x84] ss:$8 sps:$4 sm:$0xff]   ;;  %s1031_s30 = sshll.u32 %s1479_s29, 4  ;;  %s1032_s30 = int_to_ptr.vmem [resolvable:$true] %s1031_s30 }
  0x58   :  { %563 = vmatpush2.bf16.msra.mxu1 %v1248_v35  ;;  %521 = vmatprep.subr.bf16.mxu0 %v1249_v36  ;;  %v1342_v35 = vld [vmem:[#allocation7 + $0x80] ss:$8 sps:$4 sm:$0xff]   ;;  %v1345_v36 = vld [vmem:[#allocation8 + $0x78] sm:$0xff]   ;;  %s1441_s8 = scalar_lea.vmem %s1032_s30, 256  ;;  %p1446_p7 = scmp.lt.s32.totalorder %s1032_s30, %s1032_s30 }
  0x59   :  { %564 = vmatprep.subr.bf16.mxu1 %v1251_v37  ;;  %v1346_v37 = vld [vmem:[#allocation8 + $0x38] sm:$0xff]   ;;  %p1442_p6 = scmp.ne.s32.totalorder %s1032_s30, %s1441_s8  ;;  %p1447_p8 = scmp.lt.s32.totalorder %s1441_s8, %s1441_s8 }
  0x5b   :  { %522 = vmatpush2.bf16.msra.mxu0 %v1253_v38  ;;  %v1347_v38 = vld [vmem:[#allocation8 + $0x70] sm:$0xff]   ;;  %p1448_p9 = por %p1447_p8, %p1446_p7 }
  0x5c   :  { %565 = vmatpush2.bf16.msra.mxu1 %v1254_v39  ;;  %523 = vmatprep.subr.bf16.mxu0 %v1255_v40  ;;  %v1348_v39 = vld [vmem:[#allocation8 + $0x30] sm:$0xff]   ;;  %v1349_v40 = vld [vmem:[#allocation8 + $0x68] sm:$0xff]  }
  0x5d   :  { %566 = vmatprep.subr.bf16.mxu1 %v1257_v41  ;;  %v1350_v41 = vld [vmem:[#allocation8 + $0x28] sm:$0xff]   ;;  %p1449_p10 = pnand %p1448_p9, %p1442_p6 }
  0x5f   :  { %524 = vmatpush2.bf16.msra.mxu0 %v1259_v42  ;;  %v1351_v42 = vld [vmem:[#allocation8 + $0x60] sm:$0xff]  }
  0x60   :  { %567 = vmatpush2.bf16.msra.mxu1 %v1260_v43  ;;  %525 = vmatprep.subr.bf16.mxu0 %v1261_v44  ;;  %v1352_v43 = vld [vmem:[#allocation8 + $0x20] sm:$0xff]   ;;  %v1353_v44 = vld [vmem:[#allocation8 + $0x58] sm:$0xff]  }
  0x61   :  { %568 = vmatprep.subr.bf16.mxu1 %v1263_v45  ;;  %v1354_v45 = vld [vmem:[#allocation8 + $0x18] sm:$0xff]  }
  0x63   :  { %526 = vmatpush2.bf16.msra.mxu0 %v1265_v46  ;;  %v153_v46 = vlaneseq }
  0x64   :  { %569 = vmatpush2.bf16.msra.mxu1 %v1266_v47  ;;  %527 = vmatprep.subr.bf16.mxu0 %v1267_v48 }
  0x65   :  { %570 = vmatprep.subr.bf16.mxu1 %v1269_v50  ;;  %v154_v47 = vshrl.u32 %v153_v46, 7  ;;  %v151_v50 = vld [vmem:[%s1555_s2] sm:$0x3] }
  0x67   :  { %528 = vmatpush2.bf16.msra.mxu0 %v1271_v52  ;;  %v159_v48 = vsub.s32 1, %v154_v47  ;;  %v155_v49 = vsub.s32 0, %v154_v47 }
  0x68   :  { %571 = vmatpush2.bf16.msra.mxu1 %v1272_v53  ;;  %529 = vmatprep.subr.bf16.mxu0 %v1273_v54 }
  0x69   :  { %572 = vmatprep.subr.bf16.mxu1 %v1275_v55  ;;  %v160_v51 = vrot.slane %v151_v50, %v159_v48  ;;  %v156_v52 = vrot.slane %v151_v50, %v155_v49 }
  0x6b   :  { %530 = vmatpush2.bf16.msra.mxu0 %v1277_v56 }
  0x6c   :  { %573 = vmatpush2.bf16.msra.mxu1 %v1278_v57  ;;  %531 = vmatprep.subr.bf16.mxu0 %v1279_v58 }
  0x6d   :  { %574 = vmatprep.subr.bf16.mxu1 %v1281_v59 }
  0x6f   :  { %532 = vmatpush2.bf16.msra.mxu0 %v1283_v60 }
  0x70   :  { %575 = vmatpush2.bf16.msra.mxu1 %v1284_v61  ;;  %533 = vmatprep.subr.bf16.mxu0 %v1285_v62 }
  0x71   :  { %576 = vmatprep.subr.bf16.mxu1 %v1287_v63 }
  0x73   :  { %534 = vmatpush2.bf16.msra.mxu0 %v1289_v0 }
  0x74   :  { %577 = vmatpush2.bf16.msra.mxu1 %v1290_v1  ;;  %799 = vmatprep.subr.bf16.mxu0 %v1299_v4 }
  0x75   :  { %1162 = vmatprep.subr.bf16.mxu1 %v1345_v36 }
  0x76   :  { %536 = vmatmul.mubr.bf16.vlgmr.msra.gmra.mxu0 %v1291_v2 }
  0x77   :  { %579 = vmatmul.mubr.bf16.vlgmr.msra.gmra.mxu1 %v1294_v3  ;;  %800 = vmatpush1.bf16.msra.mxu0 %v1297_v5 }
  0x78   :  { %801 = vmatprep.subr.bf16.mxu0 %v1302_v6  ;;  %1163 = vmatpush3.bf16.msra.mxu1 %v1346_v37 }
  0x79   :  { %1164 = vmatprep.subr.bf16.mxu1 %v1347_v38 }
  0x7b   :  { %802 = vmatpush1.bf16.msra.mxu0 %v1300_v7 }
  0x7c   :  { %803 = vmatprep.subr.bf16.mxu0 %v1305_v8  ;;  %1165 = vmatpush3.bf16.msra.mxu1 %v1348_v39 }
  0x7d   :  { %1166 = vmatprep.subr.bf16.mxu1 %v1349_v40 }
  0x7f   :  { %804 = vmatpush1.bf16.msra.mxu0 %v1303_v9 }
  0x80   :  { %805 = vmatprep.subr.bf16.mxu0 %v1308_v10  ;;  %1167 = vmatpush3.bf16.msra.mxu1 %v1350_v41 }
  0x81   :  { %1168 = vmatprep.subr.bf16.mxu1 %v1351_v42 }
  0x83   :  { %806 = vmatpush1.bf16.msra.mxu0 %v1306_v11  ;;  %v1355_v11 = vld [vmem:[#allocation8 + $0x50] sm:$0xff]  }
  0x84   :  { %807 = vmatprep.subr.bf16.mxu0 %v1311_v12  ;;  %1169 = vmatpush3.bf16.msra.mxu1 %v1352_v43  ;;  %v1356_v12 = vld [vmem:[#allocation8 + $0x10] sm:$0xff]  }
  0x85   :  { %1170 = vmatprep.subr.bf16.mxu1 %v1353_v44 }
  0x87   :  { %808 = vmatpush1.bf16.msra.mxu0 %v1309_v13  ;;  %v1357_v13 = vld [vmem:[#allocation8 + $0x48] sm:$0xff]  }
  0x88   :  { %809 = vmatprep.subr.bf16.mxu0 %v1314_v14  ;;  %1171 = vmatpush3.bf16.msra.mxu1 %v1354_v45  ;;  %v1358_v14 = vld [vmem:[#allocation8 + $0x8] sm:$0xff]  }
  0x89   :  { %1172 = vmatprep.subr.bf16.mxu1 %v1355_v11 }
  0x8b   :  { %810 = vmatpush1.bf16.msra.mxu0 %v1312_v15  ;;  %v1359_v15 = vld [vmem:[#allocation8 + $0x40] sm:$0xff]  }
  0x8c   :  { %811 = vmatprep.subr.bf16.mxu0 %v1317_v16  ;;  %1173 = vmatpush3.bf16.msra.mxu1 %v1356_v12  ;;  %v1360_v16 = vld [vmem:[#allocation8] sm:$0xff]  }
  0x8d   :  { %1174 = vmatprep.subr.bf16.mxu1 %v1357_v13 }
  0x8f   :  { %812 = vmatpush1.bf16.msra.mxu0 %v1315_v17  ;;  %v627_v17 = vld [vmem:[%s1557_s4] sm:$0x3] }
  0x90   :  { %813 = vmatprep.subr.bf16.mxu0 %v1320_v18  ;;  %1175 = vmatpush3.bf16.msra.mxu1 %v1358_v14 }
  0x91   :  { %1176 = vmatprep.subr.bf16.mxu1 %v1359_v15 }
  0x93   :  { %814 = vmatpush1.bf16.msra.mxu0 %v1318_v19  ;;  %v636_v19 = vrot.slane %v627_v17, %v159_v48 }
  0x94   :  { %815 = vmatprep.subr.bf16.mxu0 %v1323_v20  ;;  %1177 = vmatpush3.bf16.msra.mxu1 %v1360_v16  ;;  %v632_v20 = vrot.slane %v627_v17, %v155_v49 }
  0x97   :  { %816 = vmatpush2.bf16.msra.mxu0 %v1321_v21 }
  0x98   :  { %817 = vmatprep.subr.bf16.mxu0 %v1326_v22 }
  0x9b   :  { %818 = vmatpush2.bf16.msra.mxu0 %v1324_v23 }
  0x9c   :  { %819 = vmatprep.subr.bf16.mxu0 %v1329_v24 }
  0x9f   :  { %820 = vmatpush2.bf16.msra.mxu0 %v1327_v25 }
  0xa0   :  { %821 = vmatprep.subr.bf16.mxu0 %v1332_v26 }
  0xa3   :  { %822 = vmatpush2.bf16.msra.mxu0 %v1330_v27 }
  0xa4   :  { %823 = vmatprep.subr.bf16.mxu0 %v1335_v28 }
  0xa7   :  { %824 = vmatpush2.bf16.msra.mxu0 %v1333_v29 }
  0xa8   :  { %825 = vmatprep.subr.bf16.mxu0 %v1338_v30 }
  0xab   :  { %826 = vmatpush2.bf16.msra.mxu0 %v1336_v31 }
  0xac   :  { %827 = vmatprep.subr.bf16.mxu0 %v1341_v32 }
  0xaf   :  { %828 = vmatpush2.bf16.msra.mxu0 %v1339_v33 }
  0xb0   :  { %829 = vmatprep.subr.bf16.mxu0 %v1344_v34 }
  0xb3   :  { %830 = vmatpush2.bf16.msra.mxu0 %v1342_v35  ;;  %v1145_v35 = vld [vmem:[%s1559_s6] ss:$0 sm:$0xff] }
 0x136   :  { %v537_v53 = vpop.f32.mrf.mxu0 }
 0x137   :  { %v580_v54 = vpop.f32.mrf.mxu1  ;;  %v538_v58 = vadd.f32 %v537_v53, %v156_v52 }
 0x138   :  { %v539_v55 = vpop.f32.mrf.mxu0 }
 0x139   :  { %v582_v56 = vpop.f32.mrf.mxu1  ;;  %v540_v57 = vadd.f32 %v539_v55, %v160_v51  ;;  %v581_v2 = vadd.f32 %v580_v54, %v538_v58 }
 0x13a   :  { %v541_v59 = vpop.f32.mrf.mxu0 }
 0x13b   :  { %v584_v60 = vpop.f32.mrf.mxu1  ;;  %v542_v61 = vadd.f32 %v541_v59, %v156_v52  ;;  %v583_v63 = vadd.f32 %v582_v56, %v540_v57  ;;  %v589_v8 = vmax.f32 %v581_v2, 0.0 }
 0x13c   :  { %v543_v62 = vpop.f32.mrf.mxu0 }
 0x13d   :  { %v585_v0 = vadd.f32 %v584_v60, %v542_v61  ;;  %v544_v1 = vadd.f32 %v543_v62, %v160_v51  ;;  %v586_v3 = vpop.f32.mrf.mxu1  ;;  %v590_v6 = vmax.f32 %v583_v63, 0.0 }
 0x13f   :  { %v587_v4 = vadd.f32 %v586_v3, %v544_v1  ;;  %v591_v5 = vmax.f32 %v585_v0, 0.0 }
 0x141   :  { %v592_v7 = vmax.f32 %v587_v4, 0.0  ;;  %v593_v10 = vpack.c.bf16 %v591_v5, %v589_v8 }
 0x143   :  { %v594_v9 = vpack.c.bf16 %v592_v7, %v590_v6 }
 0x145   :  { %831 = vmatprep.mubr.bf16.mxu0 %v594_v9 }
 0x146   :  { %832 = vmatmul.mubr.bf16.vlgmr.msra.gmra.mxu0 %v593_v10 }
 0x206   :  { %v833_v18 = vpop.f32.mrf.mxu0 }
 0x207   :  { %v834_v25 = vadd.f32 %v833_v18, %v632_v20 }
 0x208   :  { %v835_v21 = vpop.f32.mrf.mxu0 }
 0x209   :  { %v836_v23 = vadd.f32 %v835_v21, %v636_v19  ;;  %v842_v31 = vmax.f32 %v834_v25, 0.0 }
 0x20a   :  { %v837_v22 = vpop.f32.mrf.mxu0 }
 0x20b   :  { %v838_v24 = vadd.f32 %v837_v22, %v632_v20  ;;  %v843_v29 = vmax.f32 %v836_v23, 0.0 }
 0x20c   :  { %v839_v26 = vpop.f32.mrf.mxu0 }
 0x20d   :  { %v840_v27 = vadd.f32 %v839_v26, %v636_v19  ;;  %v844_v28 = vmax.f32 %v838_v24, 0.0 }
 0x20f   :  { %v845_v30 = vmax.f32 %v840_v27, 0.0  ;;  %v846_v33 = vpack.c.bf16 %v844_v28, %v842_v31 }
 0x211   :  { %v847_v32 = vpack.c.bf16 %v845_v30, %v843_v29 }
 0x213   :  { %1015 = vmatprep.mubr.bf16.mxu1 %v847_v32 }
 0x214   :  { %1016 = vmatmul.mubr.bf16.vlgmr.msra.gmra.mxu1 %v846_v33 }
 0x2d4   :  { %v1178_v34 = vpop.f32.mrf.mxu1 }
 0x2d6   :  { %v1179_v36 = vpop.f32.mrf.mxu1 }
 0x2d7   :  { %v1180_v37 = vadd.f32 %v1179_v36, %v1178_v34 }
 0x2d8   :  { %v1181_v38 = vpop.f32.mrf.mxu1 }
 0x2d9   :  { %v1018_v39 = vadd.f32 %v1180_v37, %v1145_v35 }
 0x2da   :  { %v1182_v40 = vpop.f32.mrf.mxu1 }
 0x2db   :  { %1024 = vst [vmem:[#allocation10] sm:$0xff] %v1018_v39  ;;  %v1183_v41 = vadd.f32 %v1182_v40, %v1181_v38 }
 0x2dd   :  { %v1021_v42 = vadd.f32 %v1183_v41, %v1145_v35 }
 0x2df   :  { %1025 = vst [vmem:[#allocation10 + $0x8] sm:$0xff] %v1021_v42 }
 0x2e0   :  { %1452 = shalt.err (!%p1449_p10)
}
 0x2e1   :  { %1037 = dma.vmem_to_hbm [thread:$0]  %s1032_s30, 256, %s1560_s7, [#allocation4], %s1470_s27, %s1470_s27, %s1471_s28  }
 0x2e2   :  { %1467 = dma.done.wait [#allocation4], 256  }
 0x2e3   :  { %1468 = vsyncadd [#allocation4], 4294967040 }
 0x2e4   :  { %1041 = vsyncpa [#allocation3], 1 }
 0x2e5   :  { %1042 = vsyncpa [#allocation6], 1 }
 0x2e6   :  { %1043 = vsyncpa [#allocation9], 1 }
 0x2e7   :  { %1044 = vsyncpa [#allocation4], 1 }

</bundles_post_ra>
